<compile_context>
chip_gen: v7x
topology: tpu7x:2x2x1
jax: 0.10.0
libtpu: 0.0.40
codegen_flags: <defaults>
</compile_context>

<pallas_src>
from functools import partial

import jax
import jax.numpy as jnp
from jax import lax
from jax.experimental import pallas as pl
from jax.experimental.pallas import tpu as pltpu


def _silu(y):
    return y * jax.nn.sigmoid(y)


def _pick_tile(hw, max_t=2048):
    for cand in (2048, 1024, 512, 256, 128):
        if cand <= max_t and hw % cand == 0:
            return cand
    return hw                      # full-dim fallback (lane dim == array dim)


# ---------------- stage 1: cv1+BN+SiLU and cv2+BN(cat)+SiLU, stacked --------
def pre_kernel(x_ref, w12_ref, sc_ref, bi_ref, a_ref, z2_ref):
    c_ = a_ref.shape[0]
    t = jnp.dot(w12_ref[...], x_ref[...].astype(jnp.bfloat16),
                preferred_element_type=jnp.float32)        # (2c_, tn)
    y = _silu(t * sc_ref[...] + bi_ref[...])
    a_ref[...] = y[:c_].astype(a_ref.dtype)                # cv1 branch
    z2_ref[...] = y[c_:].astype(z2_ref.dtype)              # cv2 branch (BN+SiLU applied)


# ---------------- stage 2: fused chain of n Bottlenecks ----------------------
def bneck_chain_kernel(m_ref, w1_ref, sc1_ref, bi1_ref, w2_ref, sc2_ref,
                       bi2_ref, o_ref, pad_ref, *, W, n, shortcut, guard):
    c_ = m_ref.shape[0]
    HW = m_ref.shape[1]
    G = guard

    # zero only the two guard regions, once (interior is rewritten per bneck)
    pad_ref[:, :G] = jnp.zeros((c_, G), jnp.float32)
    pad_ref[:, G + HW:] = jnp.zeros((c_, G), jnp.float32)

    # column-wrap masks, hoisted out of the tap loops (computed in-kernel)
    xc = lax.broadcasted_iota(jnp.int32, (1, HW), 1) % W
    mask_l = xc >= 1               # reading dx = -1 is valid
    mask_r = xc <= W - 2           # reading dx = +1 is valid

    m = m_ref[...].astype(jnp.float32)                     # f32 carry across bnecks
    for k in range(n):
        b = jnp.dot(w1_ref[k], m.astype(jnp.bfloat16),
                    preferred_element_type=jnp.float32)
        b = _silu(b * sc1_ref[k] + bi1_ref[k])             # bneck cv1 (1x1+BN+SiLU)
        pad_ref[:, G:G + HW] = b

        acc = jnp.zeros((c_, HW), jnp.float32)
        if c_ % 8 == 0:
            # 3 matmuls with K = 3c_ (taps grouped per kernel row)
            for ky in range(3):
                base = G + (ky - 1) * W
                s0 = jnp.where(mask_l, pad_ref[:, base - 1:base - 1 + HW], 0.0)
                s1 = pad_ref[:, base:base + HW]
                s2 = jnp.where(mask_r, pad_ref[:, base + 1:base + 1 + HW], 0.0)
                stk = jnp.concatenate([s0, s1, s2], axis=0).astype(jnp.bfloat16)
                acc = acc + jnp.dot(w2_ref[k, ky], stk,
                                    preferred_element_type=jnp.float32)
        else:
            # fallback: 9 separate taps (avoids unaligned sublane concat)
            for ky in range(3):
                for kx in range(3):
                    base = G + (ky - 1) * W + (kx - 1)
                    s = pad_ref[:, base:base + HW]
                    if kx == 0:
                        s = jnp.where(mask_l, s, 0.0)
                    elif kx == 2:
                        s = jnp.where(mask_r, s, 0.0)
                    wk = w2_ref[k, ky, :, kx * c_:(kx + 1) * c_]
                    acc = acc + jnp.dot(wk, s.astype(jnp.bfloat16),
                                        preferred_element_type=jnp.float32)

        c = _silu(acc * sc2_ref[k] + bi2_ref[k])           # bneck cv2 (3x3+BN+SiLU)
        m = m + c if shortcut else c

    o_ref[...] = m.astype(o_ref.dtype)


# ---------------- stage 3: cv3, BN(cat)+SiLU, cv4+BN+SiLU --------------------
def post_kernel(m_ref, z2_ref, w3_ref, scz1_ref, biz1_ref, w4_ref,
                sc4_ref, bi4_ref, o_ref):
    c_ = m_ref.shape[0]
    y1 = jnp.dot(w3_ref[...], m_ref[...],
                 preferred_element_type=jnp.float32)       # cv3
    z1 = _silu(y1 * scz1_ref[...] + biz1_ref[...])         # BN(cat)/SiLU on y1 half
    if c_ % 8 == 0:
        z = jnp.concatenate([z1, z2_ref[...].astype(jnp.float32)], axis=0)
        t = jnp.dot(w4_ref[...], z.astype(jnp.bfloat16),
                    preferred_element_type=jnp.float32)    # cv4 as one K=2c_ matmul
    else:
        w4 = w4_ref[...]
        t = (jnp.dot(w4[:, :c_], z1.astype(jnp.bfloat16),
                     preferred_element_type=jnp.float32)
             + jnp.dot(w4[:, c_:], z2_ref[...],
                       preferred_element_type=jnp.float32))
    o_ref[...] = _silu(t * sc4_ref[...] + bi4_ref[...])


# ------------------------------- wrapper -------------------------------------
def bottleneck_csp_forward(x, P, *, n=1, shortcut=True):
    B, c1, H, W = x.shape
    c_ = P['w_cv1'].shape[0]
    c2 = P['w_cv4'].shape[0]
    HW = H * W

    x3 = x.reshape(B, c1, HW)                  # free reshape, no transpose
    tn = _pick_tile(HW)
    grid1 = (B, HW // tn)

    cp13 = pltpu.CompilerParams(
        dimension_semantics=("parallel", "parallel"),
        vmem_limit_bytes=32 * 1024 * 1024)

    # stacked stage-1 weights / folded-BN params (tiny, computed outside kernels)
    w12 = jnp.concatenate([P['w_cv1'], P['w_cv2']], axis=0)            # (2c_, c1)
    sc12 = jnp.concatenate([P['sc_cv1'], P['sc_bn'][c_:]], axis=0)     # (2c_, 1)
    bi12 = jnp.concatenate([P['bi_cv1'], P['bi_bn'][c_:]], axis=0)

    a, z2 = pl.pallas_call(
        pre_kernel,
        out_shape=(jax.ShapeDtypeStruct((B, c_, HW), jnp.bfloat16),
                   jax.ShapeDtypeStruct((B, c_, HW), jnp.bfloat16)),
        grid=grid1,
        in_specs=[
            pl.BlockSpec((None, c1, tn), lambda b, j: (b, 0, j)),
            pl.BlockSpec((2 * c_, c1), lambda b, j: (0, 0)),
            pl.BlockSpec((2 * c_, 1), lambda b, j: (0, 0)),
            pl.BlockSpec((2 * c_, 1), lambda b, j: (0, 0)),
        ],
        out_specs=(pl.BlockSpec((None, c_, tn), lambda b, j: (b, 0, j)),
                   pl.BlockSpec((None, c_, tn), lambda b, j: (b, 0, j))),
        compiler_params=cp13,
    )(x3, w12, sc12, bi12)

    m = a
    if n > 0:
        w1_all = jnp.stack([bp['w1'] for bp in P['bneck']])            # (n, c_, c_)
        sc1_all = jnp.stack([bp['sc1'] for bp in P['bneck']])          # (n, c_, 1)
        bi1_all = jnp.stack([bp['bi1'] for bp in P['bneck']])
        w2_all = jnp.stack([                                           # (n, 3, c_, 3c_)
            jnp.transpose(bp['w2'], (2, 0, 3, 1)).reshape(3, c_, 3 * c_)
            for bp in P['bneck']])
        sc2_all = jnp.stack([bp['sc2'] for bp in P['bneck']])
        bi2_all = jnp.stack([bp['bi2'] for bp in P['bneck']])

        G = W + 1
        cp2 = pltpu.CompilerParams(
            dimension_semantics=("parallel",),
            vmem_limit_bytes=48 * 1024 * 1024)
        m = pl.pallas_call(
            partial(bneck_chain_kernel, W=W, n=n, shortcut=shortcut, guard=G),
            out_shape=jax.ShapeDtypeStruct((B, c_, HW), jnp.bfloat16),
            grid=(B,),
            in_specs=[
                pl.BlockSpec((None, c_, HW), lambda b: (b, 0, 0)),
                pl.BlockSpec((n, c_, c_), lambda b: (0, 0, 0)),
                pl.BlockSpec((n, c_, 1), lambda b: (0, 0, 0)),
                pl.BlockSpec((n, c_, 1), lambda b: (0, 0, 0)),
                pl.BlockSpec((n, 3, c_, 3 * c_), lambda b: (0, 0, 0, 0)),
                pl.BlockSpec((n, c_, 1), lambda b: (0, 0, 0)),
                pl.BlockSpec((n, c_, 1), lambda b: (0, 0, 0)),
            ],
            out_specs=pl.BlockSpec((None, c_, HW), lambda b: (b, 0, 0)),
            scratch_shapes=[pltpu.VMEM((c_, HW + 2 * G), jnp.float32)],
            compiler_params=cp2,
        )(m, w1_all, sc1_all, bi1_all, w2_all, sc2_all, bi2_all)

    out = pl.pallas_call(
        post_kernel,
        out_shape=jax.ShapeDtypeStruct((B, c2, HW), jnp.float32),
        grid=grid1,
        in_specs=[
            pl.BlockSpec((None, c_, tn), lambda b, j: (b, 0, j)),
            pl.BlockSpec((None, c_, tn), lambda b, j: (b, 0, j)),
            pl.BlockSpec((c_, c_), lambda b, j: (0, 0)),
            pl.BlockSpec((c_, 1), lambda b, j: (0, 0)),
            pl.BlockSpec((c_, 1), lambda b, j: (0, 0)),
            pl.BlockSpec((c2, 2 * c_), lambda b, j: (0, 0)),
            pl.BlockSpec((c2, 1), lambda b, j: (0, 0)),
            pl.BlockSpec((c2, 1), lambda b, j: (0, 0)),
        ],
        out_specs=pl.BlockSpec((None, c2, tn), lambda b, j: (b, 0, j)),
        compiler_params=cp13,
    )(m, z2, P['w_cv3'], P['sc_bn'][:c_], P['bi_bn'][:c_],
      P['w_cv4'], P['sc_cv4'], P['bi_cv4'])

    return out.reshape(B, c2, H, W)            # free reshape, no transpose


# -------------------- deterministic parameter init ---------------------------
def _fold_bn(key, c, eps=1e-5):
    kg, kb, km, kv = jax.random.split(key, 4)
    g = 1.0 + 0.1 * jax.random.normal(kg, (c,), jnp.float32)
    b = 0.1 * jax.random.normal(kb, (c,), jnp.float32)
    m = 0.05 * jax.random.normal(km, (c,), jnp.float32)
    v = 1.0 + 0.1 * jax.random.uniform(kv, (c,), jnp.float32)
    sc = g / jnp.sqrt(v + eps)
    bi = b - m * sc
    return sc.reshape(c, 1), bi.reshape(c, 1)


def init_params(key, c1, c2, n=1, e=0.5):
    c_ = int(c2 * e)
    keys = iter(jax.random.split(key, 8 + 4 * n))

    def w(shape, scale):
        return (scale * jax.random.normal(next(keys), shape,
                                          jnp.float32)).astype(jnp.bfloat16)

    P = {}
    P['w_cv1'] = w((c_, c1), 0.3)
    P['sc_cv1'], P['bi_cv1'] = _fold_bn(next(keys), c_)
    P['w_cv2'] = w((c_, c1), 0.3)
    P['w_cv3'] = w((c_, c_), 0.3)
    P['w_cv4'] = w((c2, 2 * c_), 0.3)
    P['sc_cv4'], P['bi_cv4'] = _fold_bn(next(keys), c2)
    P['sc_bn'], P['bi_bn'] = _fold_bn(next(keys), 2 * c_)
    bnecks = []
    for _ in range(n):
        bp = {}
        bp['w1'] = w((c_, c_), 0.3)
        bp['sc1'], bp['bi1'] = _fold_bn(next(keys), c_)
        bp['w2'] = w((c_, c_, 3, 3), 0.15)                 # OIHW
        bp['sc2'], bp['bi2'] = _fold_bn(next(keys), c_)
        bnecks.append(bp)
    P['bneck'] = bnecks
    return P


# -------- pure-JAX reference (mirrors the kernel's bf16 inter-stage policy) --
def ref_forward(x, P, *, n=1, shortcut=True):
    c_ = P['w_cv1'].shape[0]
    f32 = jnp.float32

    def bf(t):
        return t.astype(jnp.bfloat16)

    def c1x1(wq, t):                                       # wq (o,i) bf16
        return jnp.einsum('oi,bihw->bohw', wq, bf(t), preferred_element_type=f32)

    def bnsc(t, sc, bi):
        return t * sc[:, 0][None, :, None, None] + bi[:, 0][None, :, None, None]

    def silu(t):
        return t * jax.nn.sigmoid(t)

    a = bf(silu(bnsc(c1x1(P['w_cv1'], x), P['sc_cv1'], P['bi_cv1'])))
    z2 = bf(silu(bnsc(c1x1(P['w_cv2'], x), P['sc_bn'][c_:], P['bi_bn'][c_:])))
    m = a.astype(f32)
    for k in range(n):
        bp = P['bneck'][k]
        b = silu(bnsc(c1x1(bp['w1'], m), bp['sc1'], bp['bi1']))
        c = lax.conv_general_dilated(bf(b), bp['w2'], (1, 1), ((1, 1), (1, 1)),
                                     dimension_numbers=('NCHW', 'OIHW', 'NCHW'),
                                     preferred_element_type=f32)
        c = silu(bnsc(c, bp['sc2'], bp['bi2']))
        m = m + c if shortcut else c
    m = bf(m)
    y1 = c1x1(P['w_cv3'], m)
    z1 = bf(silu(bnsc(y1, P['sc_bn'][:c_], P['bi_bn'][:c_])))
    t = (jnp.einsum('oi,bihw->bohw', P['w_cv4'][:, :c_], z1, preferred_element_type=f32)
         + jnp.einsum('oi,bihw->bohw', P['w_cv4'][:, c_:], z2, preferred_element_type=f32))
    return silu(bnsc(t, P['sc_cv4'], P['bi_cv4']))


if __name__ == "__main__":
    B, C1, C2, H, W = 2, 16, 16, 16, 16        # c_ = 8, per-image HW = 256
    n, shortcut = 2, True
    key = jax.random.PRNGKey(0)
    kx, kp = jax.random.split(key)
    x = jax.random.normal(kx, (B, C1, H, W), jnp.float32)
    params = init_params(kp, C1, C2, n=n)

    out = jax.block_until_ready(
        bottleneck_csp_forward(x, params, n=n, shortcut=shortcut))
    ref = jax.block_until_ready(ref_forward(x, params, n=n, shortcut=shortcut))

    assert out.shape == (B, C2, H, W)
    err = float(jnp.max(jnp.abs(out - ref)))
    assert jnp.allclose(out, ref, rtol=5e-3, atol=5e-3), f"max abs err {err}"
    print("KERNEL_OK")
</pallas_src>

<mosaic_0001>
module attributes {stable_mosaic.version = 11 : i64} {
  func.func @pre_kernel(%arg0: i32, %arg1: i32, %arg2: memref<1x16x256xf32, #tpu.memory_space<vmem>>, %arg3: memref<16x16xbf16, #tpu.memory_space<vmem>>, %arg4: memref<16x1xf32, #tpu.memory_space<vmem>>, %arg5: memref<16x1xf32, #tpu.memory_space<vmem>>, %arg6: memref<1x8x256xbf16, #tpu.memory_space<vmem>>, %arg7: memref<1x8x256xbf16, #tpu.memory_space<vmem>>) attributes {dimension_semantics = [#tpu.dimension_semantics<parallel>, #tpu.dimension_semantics<parallel>], iteration_bounds = array<i64: 2, 1>, scalar_prefetch = 0 : i64, scratch_operands = 0 : i64, tpu.core_type = #tpu.core_type<tc>, window_params = [{transform_indices = @transform_0, window_bounds = array<i64: 1, 16, 256>}, {pipeline_mode = #tpu.pipeline_mode<synchronous>, transform_indices = @transform_1, window_bounds = array<i64: 16, 16>}, {pipeline_mode = #tpu.pipeline_mode<synchronous>, transform_indices = @transform_2, window_bounds = array<i64: 16, 1>}, {pipeline_mode = #tpu.pipeline_mode<synchronous>, transform_indices = @transform_3, window_bounds = array<i64: 16, 1>}, {transform_indices = @transform_4, window_bounds = array<i64: 1, 8, 256>}, {transform_indices = @transform_5, window_bounds = array<i64: 1, 8, 256>}]} {
    %c0 = arith.constant 0 : index
    %c0_0 = arith.constant 0 : index
    %0 = vector.load %arg3[%c0, %c0_0] : memref<16x16xbf16, #tpu.memory_space<vmem>>, vector<16x16xbf16>
    %c0_1 = arith.constant 0 : index
    %c0_2 = arith.constant 0 : index
    %c0_3 = arith.constant 0 : index
    %1 = vector.load %arg2[%c0_1, %c0_2, %c0_3] : memref<1x16x256xf32, #tpu.memory_space<vmem>>, vector<1x16x256xf32>
    %2 = vector.shape_cast %1 : vector<1x16x256xf32> to vector<16x256xf32>
    %3 = arith.truncf %2 : vector<16x256xf32> to vector<16x256xbf16>
    %cst = arith.constant dense<0.000000e+00> : vector<16x256xf32>
    %4 = tpu.matmul %0, %3, %cst {dimension_numbers = #tpu.dot_dimension_numbers<[1], [0], [0], [1], [0, 0, 1, 1], [], []>} : vector<16x16xbf16>, vector<16x256xbf16>, vector<16x256xf32> -> vector<16x256xf32>
    %c0_4 = arith.constant 0 : index
    %c0_5 = arith.constant 0 : index
    %5 = vector.load %arg4[%c0_4, %c0_5] : memref<16x1xf32, #tpu.memory_space<vmem>>, vector<16x1xf32>
    %6 = vector.broadcast %5 : vector<16x1xf32> to vector<16x256xf32>
    %7 = arith.mulf %4, %6 : vector<16x256xf32>
    %c0_6 = arith.constant 0 : index
    %c0_7 = arith.constant 0 : index
    %8 = vector.load %arg5[%c0_6, %c0_7] : memref<16x1xf32, #tpu.memory_space<vmem>>, vector<16x1xf32>
    %9 = vector.broadcast %8 : vector<16x1xf32> to vector<16x256xf32>
    %10 = arith.addf %7, %9 : vector<16x256xf32>
    %11 = arith.negf %10 : vector<16x256xf32>
    %12 = math.exp %11 : vector<16x256xf32>
    %cst_8 = arith.constant 1.000000e+00 : f32
    %13 = vector.broadcast %cst_8 : f32 to vector<16x256xf32>
    %14 = arith.addf %13, %12 : vector<16x256xf32>
    %15 = arith.divf %13, %14 : vector<16x256xf32>
    %16 = arith.mulf %10, %15 : vector<16x256xf32>
    %17 = vector.extract_strided_slice %16 {offsets = [0, 0], sizes = [8, 256], strides = [1, 1]} : vector<16x256xf32> to vector<8x256xf32>
    %18 = arith.truncf %17 : vector<8x256xf32> to vector<8x256xbf16>
    %c0_9 = arith.constant 0 : index
    %c0_10 = arith.constant 0 : index
    %c0_11 = arith.constant 0 : index
    %19 = vector.load %arg6[%c0_9, %c0_10, %c0_11] : memref<1x8x256xbf16, #tpu.memory_space<vmem>>, vector<1x8x256xbf16>
    %20 = vector.shape_cast %19 : vector<1x8x256xbf16> to vector<8x256xbf16>
    %21 = vector.shape_cast %18 : vector<8x256xbf16> to vector<1x8x256xbf16>
    tpu.vector_store %arg6[%c0_9, %c0_10, %c0_11], %21 {strides = array<i32>} : memref<1x8x256xbf16, #tpu.memory_space<vmem>>, vector<1x8x256xbf16>,
    %22 = vector.extract_strided_slice %16 {offsets = [8, 0], sizes = [8, 256], strides = [1, 1]} : vector<16x256xf32> to vector<8x256xf32>
    %23 = arith.truncf %22 : vector<8x256xf32> to vector<8x256xbf16>
    %c0_12 = arith.constant 0 : index
    %c0_13 = arith.constant 0 : index
    %c0_14 = arith.constant 0 : index
    %24 = vector.load %arg7[%c0_12, %c0_13, %c0_14] : memref<1x8x256xbf16, #tpu.memory_space<vmem>>, vector<1x8x256xbf16>
    %25 = vector.shape_cast %24 : vector<1x8x256xbf16> to vector<8x256xbf16>
    %26 = vector.shape_cast %23 : vector<8x256xbf16> to vector<1x8x256xbf16>
    tpu.vector_store %arg7[%c0_12, %c0_13, %c0_14], %26 {strides = array<i32>} : memref<1x8x256xbf16, #tpu.memory_space<vmem>>, vector<1x8x256xbf16>,
    return
  }
  func.func @transform_0(%arg0: i32, %arg1: i32) -> (i32, i32, i32) {
    %c0_i32 = arith.constant 0 : i32
    %c0_i32_0 = arith.constant 0 : i32
    return %arg0, %c0_i32, %arg1 : i32, i32, i32
  }
  func.func @transform_1(%arg0: i32, %arg1: i32) -> (i32, i32) {
    %c0_i32 = arith.constant 0 : i32
    %c0_i32_0 = arith.constant 0 : i32
    %c0_i32_1 = arith.constant 0 : i32
    return %c0_i32, %c0_i32_0 : i32, i32
  }
  func.func @transform_2(%arg0: i32, %arg1: i32) -> (i32, i32) {
    %c0_i32 = arith.constant 0 : i32
    %c0_i32_0 = arith.constant 0 : i32
    %c0_i32_1 = arith.constant 0 : i32
    return %c0_i32, %c0_i32_0 : i32, i32
  }
  func.func @transform_3(%arg0: i32, %arg1: i32) -> (i32, i32) {
    %c0_i32 = arith.constant 0 : i32
    %c0_i32_0 = arith.constant 0 : i32
    %c0_i32_1 = arith.constant 0 : i32
    return %c0_i32, %c0_i32_0 : i32, i32
  }
  func.func @transform_4(%arg0: i32, %arg1: i32) -> (i32, i32, i32) {
    %c0_i32 = arith.constant 0 : i32
    %c0_i32_0 = arith.constant 0 : i32
    return %arg0, %c0_i32, %arg1 : i32, i32, i32
  }
  func.func @transform_5(%arg0: i32, %arg1: i32) -> (i32, i32, i32) {
    %c0_i32 = arith.constant 0 : i32
    %c0_i32_0 = arith.constant 0 : i32
    return %arg0, %c0_i32, %arg1 : i32, i32, i32
  }
}

</mosaic_0001>

<bundles_post_ra>
// kernel: tpu_custom_call.1
= control target key start
LH: loop header
LB: loop body
LE: loop exit
PB: predicated region body
PF: predicated region fallthrough
CT: control target
= control target key end

     0   :  { %11 = vsyncpa [#allocation3], 0  ;;  %s1098_s0 = inlined_call_operand.hbm [shape: f32[2,16,256], index: 0, kind: input, shape index: {}]   ;;  %s1099_s1 = inlined_call_operand.vmem [shape: bf16[16,16], index: 1, kind: input, shape index: {}]   ;;  %s1100_s2 = inlined_call_operand.vmem [shape: f32[16,1], index: 2, kind: input, shape index: {}]   ;;  %s1101_s3 = inlined_call_operand.vmem [shape: f32[16,1], index: 3, kind: input, shape index: {}]   ;;  %s1102_s4 = inlined_call_operand.hbm [shape: bf16[2,8,256], index: 4, kind: output, shape index: {0}]   ;;  %s1103_s5 = inlined_call_operand.hbm [shape: bf16[2,8,256], index: 5, kind: output, shape index: {1}]  }
   0x1   :  { %13 = vsyncpa [#allocation3 + $0x1], 0 }
   0x2   :  { %14 = vsyncpa [#allocation4], 0 }
   0x3   :  { %16 = vsyncpa [#allocation4 + $0x1], 0 }
   0x4   :  { %17 = vsyncpa [#allocation7], 0 }
   0x5   :  { %19 = vsyncpa [#allocation7 + $0x1], 0  ;;  %s876_s18 = smov 0   ;;  %s878_s19 = smov 0  }
   0x6   :  { %s880_s20 = smov 0   ;;  %s882_s21 = smov 0  }
   0x7   :  { %s884_s22 = smov 0   ;;  %s886_s23 = smov 0  }
   0x8 LB: > { %s573_s24 = sadd.s32 4294967295, %s838_s23   ;;  %s574_s25 = sadd.s32 4294967294, %s838_s23   ;;  %s838_s23 = sphi %s886_s23, %s25_s23   ;;  %s834_s22 = sphi %s884_s22, %s1118_s22   ;;  %s830_s21 = sphi %s882_s21, %s1117_s21   ;;  %s826_s20 = sphi %s880_s20, %s1116_s20   ;;  %s822_s19 = sphi %s878_s19, %s1115_s19   ;;  %s818_s18 = sphi %s876_s18, %s1114_s18  }
   0x9   : > { %s37_s26 = sadd.s32 1, %s834_s22  ;;  %s46_s27 = sadd.s32 1, %s826_s20 }
   0xa   : > { %p39_p0 = scmp.ge.s32.totalorder %s37_s26, 2  ;;  %p53_p1 = scmp.ne.s32.totalorder %s826_s20, %s822_s19 }
   0xb   : > { %p54_p2 = scmp.eq.s32.totalorder %s838_s23, 0  ;;  %p59_p3 = scmp.ne.s32.totalorder %s822_s19, %s818_s18 }
   0xc   : > { %s1120_s26 = smov (%p39_p0, %s37_s26), 0  ;;  %p60_p5 = scmp.eq.s32.totalorder %s573_s24, 0 }
   0xd   : > { %p917_p4 = por %p54_p2, %p53_p1  ;;  %s41_s29 = ssub.s32 %s834_s22, %s1120_s26 }
   0xe   : > { %p148_p6 = scmp.eq.s32.totalorder %s573_s24, 1  ;;  %p44_p7 = scmp.eq.s32.totalorder %s41_s29, 0 }
   0xf   : > { %p923_p8 = por %p60_p5, %p59_p3  ;;  %p154_p10 = scmp.eq.s32.totalorder %s574_s25, 1 }
  0x10   : > { %p927_p9 = por %p148_p6, %p53_p1  ;;  %p622_p13 = scmp.lt.s32.totalorder %s838_s23, 2 }
  0x11   : > { %s932_s7 = scalar_select %p44_p7, %s826_s20, %s46_s27  }
  0x12   : > { %s1107_s6 = scalar_select %p927_p9, 1, 0 }
  0x13   : > { %p934_p11 = por %p154_p10, %p59_p3  ;;  %s211_s9 = sand.u32 1, %s826_s20  }
  0x14   : > { %s577_s10 = sshll.u32 %s211_s9, 5  ;;  %s600_s11 = sshll.u32 %s834_s22, 9 }
  0x15   : > { %s1108_s8 = scalar_select %p934_p11, 1, 0 }
  0x16   : > { %s945_s14 = scalar_lea.hbm %s1098_s0, %s600_s11  ;;  %s215_s15 = scalar_lea.vmem [#allocation2], %s577_s10 }
  0x17   : > { %s224_s16 = sshll.u32 %s215_s15, 4  ;;  %p951_p0 = pnand %p622_p13, %p917_p4  ;;  %s947_s16 = int_to_ptr.vmem [resolvable:$true] %s224_s16 }
  0x18   : > { %s956_s24 = scalar_lea.sflag [#allocation3], %s211_s9  ;;  %s694_s25 = scalar_lea.hbm %s945_s14, 512 }
  0x19   : > { %p695_p2 = scmp.ne.s32.totalorder %s945_s14, %s694_s25  ;;  %p696_p3 = pneg %p951_p0 }
  0x1a   : > { %s699_s28 = scalar_lea.hbm %s1098_s0, 1024  ;;  %p700_p4 = scmp.lt.u32.totalorder %s945_s14, %s1098_s0 }
  0x1b   : > { %p697_p5 = pnand %p696_p3, %p695_p2  ;;  %p701_p7 = scmp.lt.u32.totalorder %s699_s28, %s694_s25 }
  0x1c   : > { %p703_p13 = scmp.lt.u32.totalorder %s694_s25, %s945_s14 }
  0x1d   : > { %p698_p6 = pneg %p697_p5  ;;  %p702_p10 = por %p701_p7, %p700_p4 }
  0x1f   : > { %p704_p12 = por %p703_p13, %p702_p10 }
  0x21   : > { %p705_p1 = pnand %p704_p12, %p698_p6 }
  0x23   : > { %708 = shalt.err (!%p705_p1)
}
  0x24   : > { %s709_s9 = scalar_lea.vmem %s947_s16, 512  ;;  %s840_s12 = smov [#allocation2]  }
  0x25   : > { %p710_p2 = scmp.ne.s32.totalorder %s947_s16, %s709_s9  ;;  %s714_s13 = sshll.u32 %s840_s12, 4  ;;  %s715_s13 = int_to_ptr.vmem [resolvable:$false] %s714_s13 }
  0x26   : > { %s716_s15 = scalar_lea.vmem %s715_s13, 1024  ;;  %p717_p9 = scmp.lt.s32.totalorder %s947_s16, %s715_s13 }
  0x27   : > { %p712_p5 = pnand %p710_p2, %p696_p3  ;;  %p718_p4 = scmp.lt.s32.totalorder %s716_s15, %s709_s9 }
  0x29   : > { %p713_p11 = pneg %p712_p5  ;;  %p719_p7 = por %p718_p4, %p717_p9 }
  0x2b   : > { %p720_p10 = pnand %p719_p7, %p713_p11 }
  0x2d   : > { %723 = shalt.err (!%p720_p10)
}
  0x2e   : > { %s841_s25 = smov 256   ;;  %s842_s27 = smov 16  }
  0x2f   : > { %614 = dma.hbm_to_vmem [thread:$0]  (!%p951_p0), %s945_s14, 512, %s947_s16, %s956_s24, %s841_s25, %s841_s25, %s842_s27  }
  0x30   : > { %p232_p12 = scmp.lt.s32.totalorder %s838_s23, 3  ;;  %p1110_p1 = scmp.ge.s32.totalorder %s838_s23, 1 }
  0x32   : > { %p233_p3 = pnand %p1110_p1, %p232_p12 }
  0x33   : > { %s988_s29 = sand.u32 (!%p233_p3), 1, %s822_s19  }
  0x34   : > { %236 = sbr.rel (%p233_p3) target bundleno = 351 (0x15f), region = 36  ;;  %s581_s28 = sshll.u32 (!%p233_p3), %s988_s29, 5 }
  0x35   : > { %s239_s10 = scalar_lea.sflag (!%p233_p3), [#allocation3], %s988_s29  ;;  %s242_s11 = scalar_lea.vmem (!%p233_p3), [#allocation2], %s581_s28 }
  0x3b   : > { %805 = dma.done.wait (%p923_p8), %s239_s10, 512  }
  0x3c   : > { %807 = vsyncadd (%p923_p8), %s239_s10, 4294966784  ;;  %v843_v0 = vmov 0   ;;  %v281_v1 = vld [vmem:[%s242_s11 + $0x8] sm:$0xff]  ;;  %v283_v2 = vld [vmem:[%s242_s11 + $0x18] sm:$0xff]  ;;  %vm291_vm0 = vcmask 130048   ;;  %s582_s27 = sshll.u32 %s988_s29, 3 }
  0x3d   : > { %327 = vmatprep.mubr.bf16.mxu0 %v843_v0  ;;  %675 = vset.pattern.permute.xlu0 %v843_v0  ;;  %v280_v3 = vld [vmem:[%s242_s11] sm:$0xff]  ;;  %v285_v4 = vpack.c.bf16 %v283_v2, %v281_v1  ;;  %v282_v5 = vld [vmem:[%s242_s11 + $0x10] sm:$0xff]  ;;  %v339_v10 = vld [vmem:[%s1100_s2 + $0x8] sm:$0xff]  ;;  %s603_s28 = sshll.u32 %s830_s21, 7  ;;  %s266_s10 = scalar_lea.vmem [#allocation5], %s582_s27 }
  0x3e   : > { %676 = vset.pattern.permute.xlu1 %v843_v0  ;;  %v284_v6 = vpack.c.bf16 %v282_v5, %v280_v3  ;;  %v338_v7 = vld [vmem:[%s1100_s2] sm:$0xff]  ;;  %v355_v11 = vld [vmem:[%s1101_s3 + $0x8] sm:$0xff]  ;;  %s438_s11 = sshll.u32 %s266_s10, 4  ;;  %s1013_s14 = scalar_lea.vmem [#allocation6], %s582_s27  ;;  %s1021_s11 = int_to_ptr.vmem [resolvable:$true] %s438_s11 }
  0x3f   : > { %v354_v8 = vld [vmem:[%s1101_s3] sm:$0xff]  ;;  %295 = vmatprep.subr.bf16.mxu0 %v285_v4  ;;  %342 = vperm.xlu0 %675, %v338_v7   ;;  %s454_s16 = sshll.u32 %s1013_s14, 4  ;;  %s1019_s30 = scalar_lea.hbm %s1102_s4, %s603_s28  ;;  %s1028_s16 = int_to_ptr.vmem [resolvable:$true] %s454_s16 }
  0x40   : > { %v677_v9 = vld [vmem:[%s1099_s1] sm:$0xff]   ;;  %296 = vmatpush1.bf16.msra.mxu0 %v284_v6  ;;  %358 = vperm.xlu1 %676, %v354_v8   ;;  %s1026_s12 = scalar_lea.hbm %s1103_s5, %s603_s28  ;;  %s417_s13 = scalar_lea.sflag [#allocation4], %s988_s29 }
  0x41   : > { %s724_s15 = scalar_lea.vmem %s1021_s11, 128  ;;  %p1111_p9 = scmp.ne.s32.totalorder %s1107_s6, 0 }
  0x42   : > { %p725_p8 = scmp.ne.s32.totalorder %s1021_s11, %s724_s15  ;;  %s844_s25 = smov [#allocation5]  }
  0x43   : > { %585 = vmatmul.mubr.msk.bf16.vlgmr.msra.gmra.mrb[0].mxu0 %vm291_vm0, %v677_v9  ;;  %347 = vperm.xlu0 %675, %v339_v10   ;;  %s728_s27 = sshll.u32 %s844_s25, 4  ;;  %s729_s27 = int_to_ptr.vmem [resolvable:$false] %s728_s27 }
  0x44   : > { %363 = vperm.xlu1 %676, %v355_v11   ;;  %p726_p11 = pnand %p725_p8, %p1111_p9  ;;  %s730_s17 = scalar_lea.vmem %s729_s27, 256 }
  0x45   : > { %p731_p6 = scmp.lt.s32.totalorder %s1021_s11, %s729_s27  ;;  %p732_p13 = scmp.lt.s32.totalorder %s730_s17, %s724_s15 }
  0x46   : > { %p727_p0 = pneg %p726_p11 }
  0x47   : > { %p733_p2 = por %p732_p13, %p731_p6 }
  0x49   : > { %p734_p5 = pnand %p733_p2, %p727_p0 }
  0xbe   : > { %v343_v12 = vpop.permute.xlu0 %342 }
  0xbf   : > { %v359_v13 = vpop.permute.xlu1 %358 }
  0xc2   : > { %v348_v17 = vpop.permute.xlu0 %347 }
  0xc3   : > { %v364_v23 = vpop.permute.xlu1 %363 }
 0x116   : > { %v329_v14 = vpop.f32.mrb[0].mxu0 }
 0x117   : > { %v350_v15 = vmul.f32 %v343_v12, %v329_v14  ;;  %v331_v16 = vpop.f32.mrb[1].mxu0 }
 0x118   : > { %v351_v18 = vmul.f32 %v343_v12, %v331_v16  ;;  %v333_v19 = vpop.f32.mrb[2].mxu0 }
 0x119   : > { %v366_v20 = vadd.f32 %v359_v13, %v350_v15  ;;  %v352_v21 = vmul.f32 %v348_v17, %v333_v19  ;;  %v335_v22 = vpop.f32.mrb[3].mxu0 }
 0x11a   : > { %v367_v24 = vadd.f32 %v359_v13, %v351_v18  ;;  %v353_v25 = vmul.f32 %v348_v17, %v335_v22 }
 0x11b   : > { %v586_v26 = vmul.f32 -1.442695, %v366_v20  ;;  %v368_v27 = vadd.f32 %v364_v23, %v352_v21 }
 0x11c   : > { %v587_v28 = vmul.f32 -1.442695, %v367_v24  ;;  %v369_v29 = vadd.f32 %v364_v23, %v353_v25 }
 0x11d   : > { %678 = vpow2.f32 %v586_v26  ;;  %v588_v30 = vmul.f32 -1.442695, %v368_v27 }
 0x11e   : > { %680 = vpow2.f32 %v587_v28  ;;  %v589_v31 = vmul.f32 -1.442695, %v369_v29 }
 0x11f   : > { %682 = vpow2.f32 %v588_v30 }
 0x120   : > { %684 = vpow2.f32 %v589_v31 }
 0x127   : > { %v679_v32 = vpop.eup %678 }
 0x128   : > { %v681_v33 = vpop.eup %680  ;;  %v382_v34 = vadd.f32 1.0, %v679_v32 }
 0x129   : > { %v683_v35 = vpop.eup %682  ;;  %v383_v36 = vadd.f32 1.0, %v681_v33 }
 0x12a   : > { %v685_v37 = vpop.eup %684  ;;  %686 = vrcp.f32 %v382_v34  ;;  %v384_v38 = vadd.f32 1.0, %v683_v35 }
 0x12b   : > { %688 = vrcp.f32 %v383_v36  ;;  %v385_v39 = vadd.f32 1.0, %v685_v37 }
 0x12c   : > { %690 = vrcp.f32 %v384_v38 }
 0x12d   : > { %692 = vrcp.f32 %v385_v39 }
 0x134   : > { %v687_v40 = vpop.eup %686 }
 0x135   : > { %v689_v41 = vpop.eup %688  ;;  %v394_v42 = vmul.f32 %v687_v40, %v366_v20 }
 0x136   : > { %v691_v43 = vpop.eup %690  ;;  %v395_v44 = vmul.f32 %v689_v41, %v367_v24 }
 0x137   : > { %v693_v45 = vpop.eup %692  ;;  %v396_v46 = vmul.f32 %v691_v43, %v368_v27 }
 0x138   : > { %v601_v47 = vpack.c.bf16 %v395_v44, %v394_v42  ;;  %v397_v48 = vmul.f32 %v693_v45, %v369_v29 }
 0x13a   : > { %v602_v49 = vpack.c.bf16 %v397_v48, %v396_v46  ;;  %406 = vst [vmem:[%s266_s10] sm:$0xff] %v601_v47 }
 0x13b   : > { %737 = shalt.err (!%p734_p5)
}
 0x13c   : > { %s738_s28 = scalar_lea.hbm %s1019_s30, 128  ;;  %s742_s21 = scalar_lea.hbm %s1102_s4, 256 }
 0x13d   : > { %p739_p4 = scmp.ne.s32.totalorder %s1019_s30, %s738_s28  ;;  %p743_p12 = scmp.lt.u32.totalorder %s1019_s30, %s1102_s4 }
 0x13e   : > { %p744_p1 = scmp.lt.u32.totalorder %s742_s21, %s738_s28  ;;  %p746_p8 = scmp.lt.u32.totalorder %s738_s28, %s1019_s30 }
 0x13f   : > { %p740_p7 = pnand %p739_p4, %p1111_p9 }
 0x140   : > { %p745_p3 = por %p744_p1, %p743_p12 }
 0x141   : > { %p741_p10 = pneg %p740_p7 }
 0x142   : > { %p747_p11 = por %p746_p8, %p745_p3 }
 0x144   : > { %p748_p0 = pnand %p747_p11, %p741_p10 }
 0x146   : > { %751 = shalt.err (!%p748_p0)
}
 0x147   : > { %607 = dma.vmem_to_hbm [thread:$0]  (%p1111_p9), %s1021_s11, 128, %s1019_s30, %s417_s13   ;;  %415 = vst [vmem:[%s1013_s14] sm:$0xff] %v602_v49 }
 0x148   : > { %s422_s15 = scalar_lea.sflag [#allocation7], %s988_s29  ;;  %s752_s27 = scalar_lea.vmem %s1028_s16, 128 }
 0x149   : > { %p753_p6 = scmp.ne.s32.totalorder %s1028_s16, %s752_s27  ;;  %s845_s17 = smov [#allocation6]  }
 0x14a   : > { %s756_s28 = sshll.u32 %s845_s17, 4  ;;  %s757_s28 = int_to_ptr.vmem [resolvable:$false] %s756_s28 }
 0x14b   : > { %p754_p13 = pnand %p753_p6, %p1111_p9  ;;  %s758_s10 = scalar_lea.vmem %s757_s28, 256 }
 0x14c   : > { %p759_p5 = scmp.lt.s32.totalorder %s1028_s16, %s757_s28  ;;  %p760_p4 = scmp.lt.s32.totalorder %s758_s10, %s752_s27 }
 0x14d   : > { %p755_p2 = pneg %p754_p13 }
 0x14e   : > { %p761_p7 = por %p760_p4, %p759_p5 }
 0x150   : > { %p762_p10 = pnand %p761_p7, %p755_p2 }
 0x152   : > { %765 = shalt.err (!%p762_p10)
}
 0x153   : > { %s766_s29 = scalar_lea.hbm %s1026_s12, 128  ;;  %s770_s30 = scalar_lea.hbm %s1103_s5, 256 }
 0x154   : > { %p767_p12 = scmp.ne.s32.totalorder %s1026_s12, %s766_s29  ;;  %p771_p8 = scmp.lt.u32.totalorder %s1026_s12, %s1103_s5 }
 0x155   : > { %p772_p11 = scmp.lt.u32.totalorder %s770_s30, %s766_s29  ;;  %p774_p6 = scmp.lt.u32.totalorder %s766_s29, %s1026_s12 }
 0x156   : > { %p768_p1 = pnand %p767_p12, %p1111_p9 }
 0x157   : > { %p773_p0 = por %p772_p11, %p771_p8 }
 0x158   : > { %p769_p3 = pneg %p768_p1 }
 0x159   : > { %p775_p13 = por %p774_p6, %p773_p0 }
 0x15b   : > { %p776_p2 = pnand %p775_p13, %p769_p3 }
 0x15d   : > { %779 = shalt.err (!%p776_p2)
}
 0x15e   : > { %608 = dma.vmem_to_hbm [thread:$0]  (%p1111_p9), %s1028_s16, 128, %s1026_s12, %s422_s15  }
 0x15f PF: > { %s466_s21 = sand.u32 1, %s818_s18   ;;  %p1112_p5 = scmp.ne.s32.totalorder %s1108_s8, 0 }
 0x160   : > { %p1113_p4 = scmp.ge.s32.totalorder %s838_s23, 2  ;;  %s467_s9 = scalar_lea.sflag [#allocation4], %s466_s21 }
 0x162   : > { %p616_p7 = pnand %p1113_p4, %p1112_p5 }
 0x164   : > { %809 = dma.done.wait (!%p616_p7), %s467_s9, 128  }
 0x165   : > { %811 = vsyncadd (!%p616_p7), %s467_s9, 4294967168  ;;  %s476_s25 = scalar_lea.sflag [#allocation7], %s466_s21 }
 0x166   : > { %813 = dma.done.wait (!%p616_p7), %s476_s25, 128  }
 0x167   : > { %815 = vsyncadd (!%p616_p7), %s476_s25, 4294967168  ;;  %s25_s23 = sadd.s32 1, %s838_s23   ;;  %s1114_s18 = smov %s822_s19 }
 0x168   : > { %p22_p10 = scmp.ge.s32.totalorder %s25_s23, 4   ;;  %s1115_s19 = smov %s826_s20 }
 0x169   : > { %s1116_s20 = smov %s932_s7  ;;  %s1117_s21 = smov %s834_s22 }
 0x16a   : > { %s1118_s22 = smov %s1120_s26  ;;  %24 = sbr.rel (!%p22_p10) target bundleno = 8 (0x8), region = 98 }
 0x171   :  { %481 = vsyncpa [#allocation3], 1 }
 0x172   :  { %483 = vsyncpa [#allocation3 + $0x1], 1 }
 0x173   :  { %484 = vsyncpa [#allocation4], 1 }
 0x174   :  { %486 = vsyncpa [#allocation4 + $0x1], 1 }
 0x175   :  { %487 = vsyncpa [#allocation7], 1 }
 0x176   :  { %489 = vsyncpa [#allocation7 + $0x1], 1 }

</bundles_post_ra>
